<compile_context>
chip_gen: v5e
topology: v5e:2x2
jax: 0.10.0
libtpu: 0.0.40
codegen_flags: <defaults>
</compile_context>

<pallas_src>
import functools

import jax
import jax.numpy as jnp
from jax.experimental import pallas as pl
from jax.experimental.pallas import tpu as pltpu


def _round_up(n, m):
    return ((n + m - 1) // m) * m


def _pad_to(a, shape):
    pads = [(0, s - d) for d, s in zip(a.shape, shape)]
    if all(p == (0, 0) for p in pads):
        return a
    return jnp.pad(a, pads)


def _generator_kernel(x_ref,
                      w1_ref, b1_ref,
                      w2_ref, b2_ref,
                      w3_ref, b3_ref,
                      w4_ref, b4_ref,
                      o_ref):
    # x arrives as the caller's fp32 rows; cast to bf16 once, in-kernel.
    x = x_ref[...].astype(jnp.bfloat16)

    # Layers 1-3: bf16 MXU matmul with fp32 accumulation, bf16 bias+ReLU
    # epilogue (padded bias lanes are zero, so padded activation columns stay
    # exactly zero and the zero-padded weight rows keep them inert).
    h = jnp.dot(x, w1_ref[...], preferred_element_type=jnp.float32)
    h = jnp.maximum(h.astype(jnp.bfloat16) + b1_ref[...], 0)

    h = jnp.dot(h, w2_ref[...], preferred_element_type=jnp.float32)
    h = jnp.maximum(h.astype(jnp.bfloat16) + b2_ref[...], 0)

    h = jnp.dot(h, w3_ref[...], preferred_element_type=jnp.float32)
    h = jnp.maximum(h.astype(jnp.bfloat16) + b3_ref[...], 0)

    # Layer 4: bias add + sigmoid in fp32 for accuracy (N = input_dim only).
    # exp -> EUP, approx reciprocal -> EUP vrcp; exp(-h)=inf for very negative
    # h still yields the correct sigmoid limit of 0.
    h = jnp.dot(h, w4_ref[...], preferred_element_type=jnp.float32)
    h = h + b4_ref[...]
    o_ref[...] = pl.reciprocal(1.0 + jnp.exp(-h), approx=True).astype(o_ref.dtype)


@functools.partial(jax.jit, static_argnames=("tile_b",))
def generator_forward(x, params, tile_b=1024):
    """params: w1..w4 stored as (in_features, out_features), b1..b4 as (1, out)."""
    batch, d_in = x.shape
    hidden2 = params["w1"].shape[1]   # hidden_dim * 2
    hidden = params["w3"].shape[1]    # hidden_dim

    # Lane-friendly padded hidden dims (multiples of 128). input_dim is NOT
    # padded: x / w1 / w4 / out use the full array extent there.
    h2_pad = _round_up(hidden2, 128)
    h_pad = _round_up(hidden, 128)

    # ---- batch tiling ------------------------------------------------------
    b_sub = _round_up(batch, 8)                       # sublane granularity
    tile_b = _round_up(min(tile_b, b_sub), 8)
    if b_sub > tile_b:
        n = pl.cdiv(b_sub, tile_b)
        if n > 1 and n % 2 == 1:                      # even tile count balances v7x's 2 TCs
            tile_b = _round_up(pl.cdiv(b_sub, n + 1), 8)
    elif b_sub >= 128:
        # A single tile would cover the whole batch -> split in two so the
        # "parallel" grid axis can feed both TensorCores on v7x.
        tile_b = _round_up(pl.cdiv(b_sub, 2), 8)
    n_tiles = pl.cdiv(batch, tile_b)                  # ragged last tile OK (masked stores)

    # ---- weight / bias preparation (small, one cast+pad each) ---------------
    bf16 = jnp.bfloat16
    w1 = _pad_to(params["w1"].astype(bf16), (d_in, h2_pad))
    w2 = _pad_to(params["w2"].astype(bf16), (h2_pad, h2_pad))
    w3 = _pad_to(params["w3"].astype(bf16), (h2_pad, h_pad))
    w4 = _pad_to(params["w4"].astype(bf16), (h_pad, d_in))
    b1 = _pad_to(params["b1"].astype(bf16), (1, h2_pad))
    b2 = _pad_to(params["b2"].astype(bf16), (1, h2_pad))
    b3 = _pad_to(params["b3"].astype(bf16), (1, h_pad))
    b4 = params["b4"].astype(jnp.float32)             # fp32 for the sigmoid tail

    def resident(shape):
        # Whole-array block, same block index every grid step: stays in VMEM
        # and is only DMA'd once (block index never changes).
        return pl.BlockSpec(shape, lambda i: (0, 0))

    # ---- cost estimate / VMEM budget ----------------------------------------
    flops = 2 * batch * (d_in * h2_pad + h2_pad * h2_pad
                         + h2_pad * h_pad + h_pad * d_in)
    bytes_accessed = (x.size * 4 + batch * d_in * 2
                      + (w1.size + w2.size + w3.size + w4.size) * 2
                      + (b1.size + b2.size + b3.size) * 2 + b4.size * 4)
    cost = pl.CostEstimate(flops=int(flops),
                           transcendentals=int(batch * d_in),
                           bytes_accessed=int(bytes_accessed))

    # Explicit VMEM limit: double-buffered io tiles + (double-buffered)
    # resident weights + generous headroom for fp32/bf16 intermediates.
    # Capped at 64 MiB so it never exceeds v7x's physical VMEM.
    weight_bytes = 2 * ((w1.size + w2.size + w3.size + w4.size) * 2
                        + (b1.size + b2.size + b3.size) * 2 + b4.size * 4)
    io_bytes = 2 * tile_b * d_in * (4 + 2)
    act_bytes = 6 * tile_b * max(h2_pad, h_pad, 128) * 4
    vmem_limit = int(min(64 * 2 ** 20,
                         max(32 * 2 ** 20,
                             1.5 * (weight_bytes + io_bytes + act_bytes))))

    out_bf16 = pl.pallas_call(
        _generator_kernel,
        out_shape=jax.ShapeDtypeStruct((batch, d_in), jnp.bfloat16),
        grid=(n_tiles,),
        in_specs=[
            pl.BlockSpec((tile_b, d_in), lambda i: (i, 0)),      # x tile (fp32, unpadded)
            resident((d_in, h2_pad)),   resident((1, h2_pad)),   # w1, b1
            resident((h2_pad, h2_pad)), resident((1, h2_pad)),   # w2, b2
            resident((h2_pad, h_pad)),  resident((1, h_pad)),    # w3, b3
            resident((h_pad, d_in)),    resident((1, d_in)),     # w4, b4
        ],
        out_specs=pl.BlockSpec((tile_b, d_in), lambda i: (i, 0)),
        compiler_params=pltpu.CompilerParams(
            dimension_semantics=("parallel",),
            vmem_limit_bytes=vmem_limit),
        cost_estimate=cost,
    )(x, w1, b1, w2, b2, w3, b3, w4, b4)

    # bf16 writeback halves HBM traffic; cast back to fp32 only to match the
    # PyTorch module's output dtype (callers that accept bf16 can skip this).
    return out_bf16.astype(jnp.float32)


def init_generator_params(key, input_dim, hidden_dim):
    """nn.Linear-style init (uniform +-1/sqrt(fan_in)); weights stored (in, out)."""
    dims = [(input_dim, hidden_dim * 2),
            (hidden_dim * 2, hidden_dim * 2),
            (hidden_dim * 2, hidden_dim),
            (hidden_dim, input_dim)]
    params = {}
    for i, (fan_in, fan_out) in enumerate(dims, start=1):
        key, kw, kb = jax.random.split(key, 3)
        bound = 1.0 / jnp.sqrt(fan_in)
        params[f"w{i}"] = jax.random.uniform(
            kw, (fan_in, fan_out), jnp.float32, minval=-bound, maxval=bound)
        params[f"b{i}"] = jax.random.uniform(
            kb, (1, fan_out), jnp.float32, minval=-bound, maxval=bound)
    return params


def _reference_forward(x, p):
    h = jnp.maximum(x @ p["w1"] + p["b1"], 0.0)
    h = jnp.maximum(h @ p["w2"] + p["b2"], 0.0)
    h = jnp.maximum(h @ p["w3"] + p["b3"], 0.0)
    return jax.nn.sigmoid(h @ p["w4"] + p["b4"])


if __name__ == "__main__":
    # Small, module-consistent shapes: batch of DNA sequences as flat vectors.
    batch = 8
    input_dim = 16     # X_train.shape[1] in the original script
    hidden_dim = 32    # 256 in the original; scaled down for a small example

    key = jax.random.PRNGKey(0)
    key, kx = jax.random.split(key)
    x = jax.random.uniform(kx, (batch, input_dim), jnp.float32)

    params = init_generator_params(key, input_dim, hidden_dim)

    out = generator_forward(x, params)
    out = jax.block_until_ready(out)

    ref = _reference_forward(x, params)
    assert out.shape == (batch, input_dim)
    assert out.dtype == jnp.float32
    # bf16 matmuls / bf16 epilogue + approximate EUP reciprocal -> loosened tol.
    assert jnp.allclose(out, ref, atol=2e-2, rtol=2e-2), \
        float(jnp.max(jnp.abs(out - ref)))

    print("KERNEL_OK")
</pallas_src>

<mosaic_0001>
module attributes {stable_mosaic.version = 11 : i64} {
  func.func @_generator_kernel(%arg0: i32, %arg1: memref<8x16xf32, #tpu.memory_space<vmem>>, %arg2: memref<16x128xbf16, #tpu.memory_space<vmem>>, %arg3: memref<1x128xbf16, #tpu.memory_space<vmem>>, %arg4: memref<128x128xbf16, #tpu.memory_space<vmem>>, %arg5: memref<1x128xbf16, #tpu.memory_space<vmem>>, %arg6: memref<128x128xbf16, #tpu.memory_space<vmem>>, %arg7: memref<1x128xbf16, #tpu.memory_space<vmem>>, %arg8: memref<128x16xbf16, #tpu.memory_space<vmem>>, %arg9: memref<1x16xf32, #tpu.memory_space<vmem>>, %arg10: memref<8x16xbf16, #tpu.memory_space<vmem>>) attributes {dimension_semantics = [#tpu.dimension_semantics<parallel>], iteration_bounds = array<i64: 1>, scalar_prefetch = 0 : i64, scratch_operands = 0 : i64, tpu.core_type = #tpu.core_type<tc>, window_params = [{transform_indices = @transform_0, window_bounds = array<i64: 8, 16>}, {pipeline_mode = #tpu.pipeline_mode<synchronous>, transform_indices = @transform_1, window_bounds = array<i64: 16, 128>}, {pipeline_mode = #tpu.pipeline_mode<synchronous>, transform_indices = @transform_2, window_bounds = array<i64: 1, 128>}, {pipeline_mode = #tpu.pipeline_mode<synchronous>, transform_indices = @transform_3, window_bounds = array<i64: 128, 128>}, {pipeline_mode = #tpu.pipeline_mode<synchronous>, transform_indices = @transform_4, window_bounds = array<i64: 1, 128>}, {pipeline_mode = #tpu.pipeline_mode<synchronous>, transform_indices = @transform_5, window_bounds = array<i64: 128, 128>}, {pipeline_mode = #tpu.pipeline_mode<synchronous>, transform_indices = @transform_6, window_bounds = array<i64: 1, 128>}, {pipeline_mode = #tpu.pipeline_mode<synchronous>, transform_indices = @transform_7, window_bounds = array<i64: 128, 16>}, {pipeline_mode = #tpu.pipeline_mode<synchronous>, transform_indices = @transform_8, window_bounds = array<i64: 1, 16>}, {transform_indices = @transform_9, window_bounds = array<i64: 8, 16>}]} {
    %c0 = arith.constant 0 : index
    %c0_0 = arith.constant 0 : index
    %0 = vector.load %arg1[%c0, %c0_0] : memref<8x16xf32, #tpu.memory_space<vmem>>, vector<8x16xf32>
    %1 = arith.truncf %0 : vector<8x16xf32> to vector<8x16xbf16>
    %c0_1 = arith.constant 0 : index
    %c0_2 = arith.constant 0 : index
    %2 = vector.load %arg2[%c0_1, %c0_2] : memref<16x128xbf16, #tpu.memory_space<vmem>>, vector<16x128xbf16>
    %cst = arith.constant dense<0.000000e+00> : vector<8x128xf32>
    %3 = tpu.matmul %1, %2, %cst {dimension_numbers = #tpu.dot_dimension_numbers<[1], [0], [0], [1], [0, 0, 1, 1], [], []>} : vector<8x16xbf16>, vector<16x128xbf16>, vector<8x128xf32> -> vector<8x128xf32>
    %4 = arith.truncf %3 : vector<8x128xf32> to vector<8x128xbf16>
    %c0_3 = arith.constant 0 : index
    %c0_4 = arith.constant 0 : index
    %5 = vector.load %arg3[%c0_3, %c0_4] : memref<1x128xbf16, #tpu.memory_space<vmem>>, vector<1x128xbf16>
    %6 = vector.broadcast %5 : vector<1x128xbf16> to vector<8x128xbf16>
    %7 = arith.addf %4, %6 : vector<8x128xbf16>
    %cst_5 = arith.constant 0.000000e+00 : bf16
    %8 = vector.broadcast %cst_5 : bf16 to vector<8x128xbf16>
    %9 = arith.maximumf %7, %8 : vector<8x128xbf16>
    %c0_6 = arith.constant 0 : index
    %c0_7 = arith.constant 0 : index
    %10 = vector.load %arg4[%c0_6, %c0_7] : memref<128x128xbf16, #tpu.memory_space<vmem>>, vector<128x128xbf16>
    %cst_8 = arith.constant dense<0.000000e+00> : vector<8x128xf32>
    %11 = tpu.matmul %9, %10, %cst_8 {dimension_numbers = #tpu.dot_dimension_numbers<[1], [0], [0], [1], [0, 0, 1, 1], [], []>} : vector<8x128xbf16>, vector<128x128xbf16>, vector<8x128xf32> -> vector<8x128xf32>
    %12 = arith.truncf %11 : vector<8x128xf32> to vector<8x128xbf16>
    %c0_9 = arith.constant 0 : index
    %c0_10 = arith.constant 0 : index
    %13 = vector.load %arg5[%c0_9, %c0_10] : memref<1x128xbf16, #tpu.memory_space<vmem>>, vector<1x128xbf16>
    %14 = vector.broadcast %13 : vector<1x128xbf16> to vector<8x128xbf16>
    %15 = arith.addf %12, %14 : vector<8x128xbf16>
    %cst_11 = arith.constant 0.000000e+00 : bf16
    %16 = vector.broadcast %cst_11 : bf16 to vector<8x128xbf16>
    %17 = arith.maximumf %15, %16 : vector<8x128xbf16>
    %c0_12 = arith.constant 0 : index
    %c0_13 = arith.constant 0 : index
    %18 = vector.load %arg6[%c0_12, %c0_13] : memref<128x128xbf16, #tpu.memory_space<vmem>>, vector<128x128xbf16>
    %cst_14 = arith.constant dense<0.000000e+00> : vector<8x128xf32>
    %19 = tpu.matmul %17, %18, %cst_14 {dimension_numbers = #tpu.dot_dimension_numbers<[1], [0], [0], [1], [0, 0, 1, 1], [], []>} : vector<8x128xbf16>, vector<128x128xbf16>, vector<8x128xf32> -> vector<8x128xf32>
    %20 = arith.truncf %19 : vector<8x128xf32> to vector<8x128xbf16>
    %c0_15 = arith.constant 0 : index
    %c0_16 = arith.constant 0 : index
    %21 = vector.load %arg7[%c0_15, %c0_16] : memref<1x128xbf16, #tpu.memory_space<vmem>>, vector<1x128xbf16>
    %22 = vector.broadcast %21 : vector<1x128xbf16> to vector<8x128xbf16>
    %23 = arith.addf %20, %22 : vector<8x128xbf16>
    %cst_17 = arith.constant 0.000000e+00 : bf16
    %24 = vector.broadcast %cst_17 : bf16 to vector<8x128xbf16>
    %25 = arith.maximumf %23, %24 : vector<8x128xbf16>
    %c0_18 = arith.constant 0 : index
    %c0_19 = arith.constant 0 : index
    %26 = vector.load %arg8[%c0_18, %c0_19] : memref<128x16xbf16, #tpu.memory_space<vmem>>, vector<128x16xbf16>
    %cst_20 = arith.constant dense<0.000000e+00> : vector<8x16xf32>
    %27 = tpu.matmul %25, %26, %cst_20 {dimension_numbers = #tpu.dot_dimension_numbers<[1], [0], [0], [1], [0, 0, 1, 1], [], []>} : vector<8x128xbf16>, vector<128x16xbf16>, vector<8x16xf32> -> vector<8x16xf32>
    %c0_21 = arith.constant 0 : index
    %c0_22 = arith.constant 0 : index
    %28 = vector.load %arg9[%c0_21, %c0_22] : memref<1x16xf32, #tpu.memory_space<vmem>>, vector<1x16xf32>
    %29 = vector.broadcast %28 : vector<1x16xf32> to vector<8x16xf32>
    %30 = arith.addf %27, %29 : vector<8x16xf32>
    %cst_23 = arith.constant 0.000000e+00 : f32
    %31 = vector.broadcast %cst_23 : f32 to vector<8x16xf32>
    %32 = arith.subf %31, %30 : vector<8x16xf32>
    %33 = math.exp %32 : vector<8x16xf32>
    %cst_24 = arith.constant 1.000000e+00 : f32
    %34 = vector.broadcast %cst_24 : f32 to vector<8x16xf32>
    %35 = arith.addf %34, %33 : vector<8x16xf32>
    %36 = tpu.reciprocal %35 {approx = true} : vector<8x16xf32> -> vector<8x16xf32>
    %37 = arith.truncf %36 : vector<8x16xf32> to vector<8x16xbf16>
    %c0_25 = arith.constant 0 : index
    %c0_26 = arith.constant 0 : index
    %38 = vector.load %arg10[%c0_25, %c0_26] : memref<8x16xbf16, #tpu.memory_space<vmem>>, vector<8x16xbf16>
    tpu.vector_store %arg10[%c0_25, %c0_26], %37 {strides = array<i32>} : memref<8x16xbf16, #tpu.memory_space<vmem>>, vector<8x16xbf16>,
    return
  }
  func.func @transform_0(%arg0: i32) -> (i32, i32) {
    %c0_i32 = arith.constant 0 : i32
    %c0_i32_0 = arith.constant 0 : i32
    return %arg0, %c0_i32 : i32, i32
  }
  func.func @transform_1(%arg0: i32) -> (i32, i32) {
    %c0_i32 = arith.constant 0 : i32
    %c0_i32_0 = arith.constant 0 : i32
    %c0_i32_1 = arith.constant 0 : i32
    return %c0_i32, %c0_i32_0 : i32, i32
  }
  func.func @transform_2(%arg0: i32) -> (i32, i32) {
    %c0_i32 = arith.constant 0 : i32
    %c0_i32_0 = arith.constant 0 : i32
    %c0_i32_1 = arith.constant 0 : i32
    return %c0_i32, %c0_i32_0 : i32, i32
  }
  func.func @transform_3(%arg0: i32) -> (i32, i32) {
    %c0_i32 = arith.constant 0 : i32
    %c0_i32_0 = arith.constant 0 : i32
    %c0_i32_1 = arith.constant 0 : i32
    return %c0_i32, %c0_i32_0 : i32, i32
  }
  func.func @transform_4(%arg0: i32) -> (i32, i32) {
    %c0_i32 = arith.constant 0 : i32
    %c0_i32_0 = arith.constant 0 : i32
    %c0_i32_1 = arith.constant 0 : i32
    return %c0_i32, %c0_i32_0 : i32, i32
  }
  func.func @transform_5(%arg0: i32) -> (i32, i32) {
    %c0_i32 = arith.constant 0 : i32
    %c0_i32_0 = arith.constant 0 : i32
    %c0_i32_1 = arith.constant 0 : i32
    return %c0_i32, %c0_i32_0 : i32, i32
  }
  func.func @transform_6(%arg0: i32) -> (i32, i32) {
    %c0_i32 = arith.constant 0 : i32
    %c0_i32_0 = arith.constant 0 : i32
    %c0_i32_1 = arith.constant 0 : i32
    return %c0_i32, %c0_i32_0 : i32, i32
  }
  func.func @transform_7(%arg0: i32) -> (i32, i32) {
    %c0_i32 = arith.constant 0 : i32
    %c0_i32_0 = arith.constant 0 : i32
    %c0_i32_1 = arith.constant 0 : i32
    return %c0_i32, %c0_i32_0 : i32, i32
  }
  func.func @transform_8(%arg0: i32) -> (i32, i32) {
    %c0_i32 = arith.constant 0 : i32
    %c0_i32_0 = arith.constant 0 : i32
    %c0_i32_1 = arith.constant 0 : i32
    return %c0_i32, %c0_i32_0 : i32, i32
  }
  func.func @transform_9(%arg0: i32) -> (i32, i32) {
    %c0_i32 = arith.constant 0 : i32
    %c0_i32_0 = arith.constant 0 : i32
    return %arg0, %c0_i32 : i32, i32
  }
}

</mosaic_0001>

<bundles_post_ra>
// kernel: generator_forward.1
= control target key start
LH: loop header
LB: loop body
LE: loop exit
PB: predicated region body
PF: predicated region fallthrough
CT: control target
= control target key end

     0   :  { %vm43_vm0 = vcmask 130048   ;;  %vm340_vm1 = vcmask 125952   ;;  %s620_s1 = inlined_call_operand.vmem [shape: bf16[16,128], index: 1, kind: input, shape index: {}]   ;;  %s621_s0 = inlined_call_operand.vmem [shape: f32[8,16], index: 0, kind: input, shape index: {}]   ;;  %s622_s3 = inlined_call_operand.vmem [shape: bf16[128,128], index: 3, kind: input, shape index: {}]   ;;  %s623_s5 = inlined_call_operand.vmem [shape: bf16[128,128], index: 5, kind: input, shape index: {}]   ;;  %s624_s2 = inlined_call_operand.vmem [shape: bf16[1,128], index: 2, kind: input, shape index: {}]   ;;  %s625_s7 = inlined_call_operand.vmem [shape: bf16[128,16], index: 7, kind: input, shape index: {}]   ;;  %s626_s4 = inlined_call_operand.vmem [shape: bf16[1,128], index: 4, kind: input, shape index: {}]   ;;  %s627_s8 = inlined_call_operand.vmem [shape: f32[1,16], index: 8, kind: input, shape index: {}]   ;;  %s628_s6 = inlined_call_operand.vmem [shape: bf16[1,128], index: 6, kind: input, shape index: {}]   ;;  %s629_s9 = inlined_call_operand.vmem [shape: bf16[8,16], index: 9, kind: output, shape index: {}]  }
   0x1   :  { %v447_v0 = vld [vmem:[%s620_s1] sm:$0xff]  ;;  %v455_v2 = vld [vmem:[%s622_s3 + $0x38] sm:$0xff]  ;;  %v454_v4 = vld [vmem:[%s622_s3 + $0x30] sm:$0xff] }
   0x2   :  { %v33_v1 = vld [vmem:[%s621_s0] sm:$0xff]  ;;  %54 = vmatpush.bf16.msra.mxu0 %v447_v0  ;;  %137 = vmatpush.bf16.msra.mxu1 %v455_v2  ;;  %v453_v5 = vld [vmem:[%s622_s3 + $0x28] sm:$0xff]  ;;  %v451_v7 = vld [vmem:[%s622_s3 + $0x18] sm:$0xff] }
   0x3   :  { %v34_v3 = vpack.c.bf16 %v33_v1, %v33_v1  ;;  %v452_v6 = vld [vmem:[%s622_s3 + $0x20] sm:$0xff]  ;;  %v450_v8 = vld [vmem:[%s622_s3 + $0x10] sm:$0xff]  ;;  %v449_v9 = vld [vmem:[%s622_s3 + $0x8] sm:$0xff] }
   0x4   :  { %v448_v10 = vld [vmem:[%s622_s3] sm:$0xff]  ;;  %v463_v11 = vld [vmem:[%s623_s5 + $0x38] sm:$0xff]  ;;  %v462_v12 = vld [vmem:[%s623_s5 + $0x30] sm:$0xff] }
   0x5   :  { %350 = vmatmul.msk.bf16.vlgmr.msra.gmra.mxu0 %vm43_vm0, %v34_v3  ;;  %227 = vmatpush.bf16.msra.mxu2 %v463_v11  ;;  %v461_v13 = vld [vmem:[%s623_s5 + $0x28] sm:$0xff]  ;;  %v460_v14 = vld [vmem:[%s623_s5 + $0x20] sm:$0xff]  ;;  %v459_v17 = vld [vmem:[%s623_s5 + $0x18] sm:$0xff] }
   0x6   :  { %138 = vmatpush.bf16.msra.mxu1 %v454_v4  ;;  %v61_v15 = vld [vmem:[%s624_s2] sm:$0x1]  ;;  %v458_v27 = vld [vmem:[%s623_s5 + $0x10] sm:$0xff]  ;;  %v457_v28 = vld [vmem:[%s623_s5 + $0x8] sm:$0xff] }
   0x7   :  { %v63_v16 = vpack.i.b16 %v61_v15, %v61_v15  ;;  %v456_v29 = vld [vmem:[%s623_s5] sm:$0xff]  ;;  %v471_v30 = vld [vmem:[%s625_s7 + $0x38] sm:$0xff]  ;;  %v470_v31 = vld [vmem:[%s625_s7 + $0x30] sm:$0xff] }
   0x8   :  { %321 = vmatpush.bf16.msra.mxu3 %v471_v30  ;;  %v469_v32 = vld [vmem:[%s625_s7 + $0x28] sm:$0xff]  ;;  %v468_v33 = vld [vmem:[%s625_s7 + $0x20] sm:$0xff]  ;;  %v467_v36 = vld [vmem:[%s625_s7 + $0x18] sm:$0xff] }
   0x9   :  { %228 = vmatpush.bf16.msra.mxu2 %v462_v12  ;;  %v65_v18 = vperm.slane %v63_v16, 0  ;;  %v151_v34 = vld [vmem:[%s626_s4] sm:$0x1]  ;;  %v466_v46 = vld [vmem:[%s625_s7 + $0x10] sm:$0xff]  ;;  %v465_v47 = vld [vmem:[%s625_s7 + $0x8] sm:$0xff] }
   0xa   :  { %139 = vmatpush.bf16.msra.mxu1 %v453_v5  ;;  %v153_v35 = vpack.i.b16 %v151_v34, %v151_v34  ;;  %v464_v48 = vld [vmem:[%s625_s7] sm:$0xff] }
   0xb   :  { %v67_v21 = vunpack.c.l.bf16 %v65_v18  ;;  %v241_v49 = vld [vmem:[%s628_s6] sm:$0x1] }
   0xc   :  { %322 = vmatpush.bf16.msra.mxu3 %v470_v31  ;;  %v155_v37 = vperm.slane %v153_v35, 0  ;;  %v243_v50 = vpack.i.b16 %v241_v49, %v241_v49  ;;  %v472_v60 = vld [vmem:[%s627_s8] ss:$0 sm:$0xff] }
   0xd   :  { %229 = vmatpush.bf16.msra.mxu2 %v461_v13 }
   0xe   :  { %140 = vmatpush.bf16.msra.mxu1 %v452_v6  ;;  %v157_v40 = vunpack.c.l.bf16 %v155_v37  ;;  %v245_v51 = vperm.slane %v243_v50, 0 }
  0x10   :  { %323 = vmatpush.bf16.msra.mxu3 %v469_v32  ;;  %v247_v54 = vunpack.c.l.bf16 %v245_v51 }
  0x11   :  { %230 = vmatpush.bf16.msra.mxu2 %v460_v14 }
  0x12   :  { %141 = vmatpush.bf16.msra.mxu1 %v451_v7 }
  0x14   :  { %324 = vmatpush.bf16.msra.mxu3 %v468_v33 }
  0x15   :  { %231 = vmatpush.bf16.msra.mxu2 %v459_v17 }
  0x16   :  { %142 = vmatpush.bf16.msra.mxu1 %v450_v8 }
  0x18   :  { %325 = vmatpush.bf16.msra.mxu3 %v467_v36 }
  0x19   :  { %232 = vmatpush.bf16.msra.mxu2 %v458_v27 }
  0x1a   :  { %143 = vmatpush.bf16.msra.mxu1 %v449_v9 }
  0x1c   :  { %326 = vmatpush.bf16.msra.mxu3 %v466_v46 }
  0x1d   :  { %233 = vmatpush.bf16.msra.mxu2 %v457_v28 }
  0x1e   :  { %144 = vmatpush.bf16.msra.mxu1 %v448_v10 }
  0x20   :  { %327 = vmatpush.bf16.msra.mxu3 %v465_v47 }
  0x21   :  { %234 = vmatpush.bf16.msra.mxu2 %v456_v29 }
  0x24   :  { %328 = vmatpush.bf16.msra.mxu3 %v464_v48 }
  0x82   :  { %v56_v19 = vpop.f32.mrf.mxu0 }
  0x83   :  { %v60_v20 = vpack.c.bf16 %v56_v19, %v56_v19 }
  0x85   :  { %v66_v22 = vunpack.c.l.bf16 %v60_v20 }
  0x87   :  { %v68_v23 = vadd.f32 %v67_v21, %v66_v22 }
  0x89   :  { %v71_v24 = vmax.f32 %v68_v23, 0.0 }
  0x8a   :  { %v58_v25 = vpop.f32.mrf.mxu0 }
  0x8b   :  { %v72_v26 = vpack.c.bf16 %v71_v24, %v71_v24 }
  0x8d   :  { %145 = vmatmul.bf16.vlgmr.msra.gmra.mxu1 %v72_v26 }
 0x10a   :  { %v146_v38 = vpop.f32.mrf.mxu1 }
 0x10b   :  { %v150_v39 = vpack.c.bf16 %v146_v38, %v146_v38 }
 0x10d   :  { %v156_v41 = vunpack.c.l.bf16 %v150_v39 }
 0x10f   :  { %v158_v42 = vadd.f32 %v157_v40, %v156_v41 }
 0x111   :  { %v161_v43 = vmax.f32 %v158_v42, 0.0 }
 0x112   :  { %v148_v44 = vpop.f32.mrf.mxu1 }
 0x113   :  { %v162_v45 = vpack.c.bf16 %v161_v43, %v161_v43 }
 0x115   :  { %235 = vmatmul.bf16.vlgmr.msra.gmra.mxu2 %v162_v45 }
 0x198   :  { %v236_v52 = vpop.f32.mrf.mxu2 }
 0x199   :  { %v240_v53 = vpack.c.bf16 %v236_v52, %v236_v52 }
 0x19b   :  { %v246_v55 = vunpack.c.l.bf16 %v240_v53 }
 0x19d   :  { %v248_v56 = vadd.f32 %v247_v54, %v246_v55 }
 0x19f   :  { %v251_v57 = vmax.f32 %v248_v56, 0.0 }
 0x1a0   :  { %v238_v58 = vpop.f32.mrf.mxu2 }
 0x1a1   :  { %v252_v59 = vpack.c.bf16 %v251_v57, %v251_v57 }
 0x1a3   :  { %329 = vmatmul.bf16.vlgmr.msra.gmra.mxu3 %v252_v59 }
 0x226   :  { %v330_v61 = vpop.f32.mrf.mxu3 }
 0x227   :  { %v331_v62 = vadd.f32 %v472_v60, %v330_v61 }
 0x229   :  { %v334_v63 = vsub.f32 0.0, %v331_v62 }
 0x22b   :  { %v335_v0 = vmul.f32 1.442695, %v334_v63 }
 0x22d   :  { %473 = vpow2.f32 %v335_v0 }
 0x22e   :  { %v332_v1 = vpop.f32.mrf.mxu3 }
 0x233   :  { %v474_v2 = vpop.eup %473 }
 0x234   :  { %v337_v3 = vadd.f32 1.0, %v474_v2 }
 0x236   :  { %475 = vrcp.f32 %v337_v3 }
 0x23c   :  { %v476_v4 = vpop.eup %475 }
 0x23d   :  { %v339_v5 = vpack.c.bf16 %v476_v4, %v476_v4 }
 0x23f   :  { %341 = vst.msk [vmem:[%s629_s9] sm:$0xf] %vm340_vm1, %v339_v5 }

</bundles_post_ra>
